<compile_context>
chip_gen: v7x
topology: tpu7x:2x2x1
jax: 0.10.0
libtpu: 0.0.40
codegen_flags: <defaults>
</compile_context>

<pallas_src>
import jax
import jax.numpy as jnp
from jax.experimental import pallas as pl
from jax.experimental.pallas import tpu as pltpu

HIDDEN = 128     # hidden width of the MLP (fixed by the PyTorch module)
LANE = 128       # TPU lane width
SUBLANE = 8      # TPU sublane count (f32 view)


def _round_up(x, m):
    return (x + m - 1) // m * m


# ----------------------------- kernels ---------------------------------------

def _mlp_train_kernel(x_ref, t_ref, w1a_ref, w1b_ref, b1_ref, w2_ref, b2_ref, o_ref):
    """h = relu(x@W1a + target@W1b + b1);  o = h @ W2 + b2 (f32 accumulation)."""
    h = jnp.dot(x_ref[...], w1a_ref[...], preferred_element_type=jnp.float32)
    h = h + jnp.dot(t_ref[...], w1b_ref[...], preferred_element_type=jnp.float32)
    h = jnp.maximum(h + b1_ref[...], 0.0)                       # ReLU
    y = jnp.dot(h.astype(w2_ref.dtype), w2_ref[...], preferred_element_type=jnp.float32)
    o_ref[...] = (y + b2_ref[...]).astype(o_ref.dtype)


def _mlp_eval_kernel(x_ref, w1_ref, b1_ref, w2_ref, b2_ref, o_ref):
    """Same MLP without the target branch (target=None path)."""
    h = jnp.dot(x_ref[...], w1_ref[...], preferred_element_type=jnp.float32)
    h = jnp.maximum(h + b1_ref[...], 0.0)
    y = jnp.dot(h.astype(w2_ref.dtype), w2_ref[...], preferred_element_type=jnp.float32)
    o_ref[...] = (y + b2_ref[...]).astype(o_ref.dtype)


# ----------------------------- wrapper ----------------------------------------

def _pick_batch_tile(B, block_b, min_blocks=4):
    """Sublane-aligned batch tile, aiming for >= min_blocks grid steps when B
    allows (so the 'parallel' axis spans both TensorCores on v7x), capped by
    block_b and by the (rounded) batch itself."""
    tb = max(SUBLANE, _round_up(pl.cdiv(B, min_blocks), SUBLANE))
    tb = min(tb, _round_up(block_b, SUBLANE))
    tb = min(tb, _round_up(B, SUBLANE))
    return tb


def mlp_forward(x, target, w1a, w1b, b1, w2, b2, *, block_b=2048,
                compute_dtype=jnp.bfloat16):
    """Fused 2-layer MLP forward.

    x:      (B, in_features)
    target: (B, num_classes) or None
    w1a:    (in_features, 128)   x-part of the first Linear, stored (in, out)
    w1b:    (num_classes, 128)   target-part (None if target is None)
    b1:     (1, 128)
    w2:     (128, num_filters)
    b2:     (1, num_filters)
    Returns (B, num_filters) in compute_dtype (bf16 by default).
    """
    B, in_features = x.shape
    num_filters = w2.shape[1]
    num_classes = target.shape[1] if target is not None else 0
    out_dtype = compute_dtype

    # bf16 streaming for the bandwidth-dominant operands; f32 biases (tiny).
    x = x.astype(compute_dtype)
    w1a = w1a.astype(compute_dtype)
    w2 = w2.astype(compute_dtype)
    b1 = b1.astype(jnp.float32)
    b2 = b2.astype(jnp.float32)
    if target is not None:
        target = target.astype(compute_dtype)
        w1b = w1b.astype(compute_dtype)

    act_isz = jnp.dtype(compute_dtype).itemsize
    out_isz = jnp.dtype(out_dtype).itemsize

    # ---- batch tiling (no padding of x/target; ragged last block is masked) ----
    tb = _pick_batch_tile(B, block_b)

    def _lane_padded_tile_bytes(rows, feats, itemsize):
        # VMEM tiles pad the last dim to the 128-lane width.
        return rows * _round_up(max(feats, 1), LANE) * itemsize

    def _footprint(tile_b):
        # Double-buffered activation/output tiles + (conservatively double-counted)
        # resident weights/biases, all with lane padding.
        f = 2 * _lane_padded_tile_bytes(tile_b, in_features, act_isz)         # x
        f += 2 * _lane_padded_tile_bytes(tile_b, num_filters, out_isz)        # out
        if target is not None:
            f += 2 * _lane_padded_tile_bytes(tile_b, num_classes, act_isz)    # target
        k1 = in_features + num_classes
        f += 2 * (_round_up(k1, SUBLANE) * HIDDEN * act_isz                   # W1a+W1b
                  + _round_up(HIDDEN, SUBLANE) * _round_up(num_filters, LANE) * act_isz  # W2
                  + _round_up(HIDDEN, LANE) * 4 + _round_up(num_filters, LANE) * 4)      # b1,b2
        return f

    VMEM_BUDGET = 40 * 1024 * 1024   # stay well inside v7x's 64 MiB physical VMEM
    while tb > SUBLANE and _footprint(tb) > VMEM_BUDGET:
        tb = max(SUBLANE, _round_up(tb // 2, SUBLANE))

    n_blocks = pl.cdiv(B, tb)
    vmem_limit = int(min(64 * 1024 * 1024,
                         max(32 * 1024 * 1024, _footprint(tb) + (8 << 20))))

    const2d = lambda i: (0, 0)          # weights/biases stay VMEM-resident
    row_map = lambda i: (i, 0)          # batch-tiled activations / output

    compiler_params = pltpu.CompilerParams(
        dimension_semantics=("parallel",),        # batch tiles shard across TCs (v7x)
        vmem_limit_bytes=vmem_limit,
    )

    k1 = in_features + num_classes
    flops = 2 * B * (k1 * HIDDEN + HIDDEN * num_filters)
    bytes_accessed = (
        B * (in_features + num_classes) * act_isz                 # activations in
        + (k1 * HIDDEN + HIDDEN * num_filters) * act_isz          # weights
        + (HIDDEN + num_filters) * 4                              # biases (f32)
        + B * num_filters * out_isz                               # output
    )
    cost = pl.CostEstimate(flops=flops, transcendentals=0,
                           bytes_accessed=bytes_accessed)

    if target is not None:
        out = pl.pallas_call(
            _mlp_train_kernel,
            out_shape=jax.ShapeDtypeStruct((B, num_filters), out_dtype),
            grid=(n_blocks,),
            in_specs=[
                pl.BlockSpec((tb, in_features), row_map),        # x tile
                pl.BlockSpec((tb, num_classes), row_map),        # target tile
                pl.BlockSpec((in_features, HIDDEN), const2d),    # W1a (resident)
                pl.BlockSpec((num_classes, HIDDEN), const2d),    # W1b (resident)
                pl.BlockSpec((1, HIDDEN), const2d),              # b1
                pl.BlockSpec((HIDDEN, num_filters), const2d),    # W2 (resident)
                pl.BlockSpec((1, num_filters), const2d),         # b2
            ],
            out_specs=pl.BlockSpec((tb, num_filters), row_map),
            compiler_params=compiler_params,
            cost_estimate=cost,
        )(x, target, w1a, w1b, b1, w2, b2)
    else:
        out = pl.pallas_call(
            _mlp_eval_kernel,
            out_shape=jax.ShapeDtypeStruct((B, num_filters), out_dtype),
            grid=(n_blocks,),
            in_specs=[
                pl.BlockSpec((tb, in_features), row_map),
                pl.BlockSpec((in_features, HIDDEN), const2d),
                pl.BlockSpec((1, HIDDEN), const2d),
                pl.BlockSpec((HIDDEN, num_filters), const2d),
                pl.BlockSpec((1, num_filters), const2d),
            ],
            out_specs=pl.BlockSpec((tb, num_filters), row_map),
            compiler_params=compiler_params,
            cost_estimate=cost,
        )(x, w1a, b1, w2, b2)

    return out


def init_params(key, in_features, num_filters, num_classes, training=True,
                dtype=jnp.bfloat16):
    """Deterministic synthetic parameters matching nn.Linear shapes.
    PyTorch stores (out, in); we store the transpose (in, out) and split the
    first Linear's weight into W1a (x part) and W1b (target part). Weights are
    stored in bf16 (streamed), biases in f32 (accumulated in f32 anyway)."""
    total_in = in_features + num_classes if training else in_features
    k1, k2, k3, k4, k5 = jax.random.split(key, 5)
    s1 = 1.0 / jnp.sqrt(total_in)
    s2 = 1.0 / jnp.sqrt(HIDDEN)
    w1a = jax.random.uniform(k1, (in_features, HIDDEN), jnp.float32, -s1, s1).astype(dtype)
    w1b = (jax.random.uniform(k5, (num_classes, HIDDEN), jnp.float32, -s1, s1).astype(dtype)
           if training else None)
    b1 = jax.random.uniform(k2, (1, HIDDEN), jnp.float32, -s1, s1)
    w2 = jax.random.uniform(k3, (HIDDEN, num_filters), jnp.float32, -s2, s2).astype(dtype)
    b2 = jax.random.uniform(k4, (1, num_filters), jnp.float32, -s2, s2)
    return w1a, w1b, b1, w2, b2


if __name__ == "__main__":
    # Small, forward-consistent shapes: batch=8, in_features=16, num_classes=4,
    # num_filters=32  (training=True => first Linear sees 16 + 4 = 20 features).
    B, IN_FEATURES, NUM_CLASSES, NUM_FILTERS = 8, 16, 4, 32

    key = jax.random.PRNGKey(0)
    kx, kt, kp = jax.random.split(key, 3)
    x = jax.random.normal(kx, (B, IN_FEATURES), jnp.float32)
    target = jax.random.normal(kt, (B, NUM_CLASSES), jnp.float32)

    w1a, w1b, b1, w2, b2 = init_params(kp, IN_FEATURES, NUM_FILTERS, NUM_CLASSES,
                                       training=True)

    latent = mlp_forward(x, target, w1a, w1b, b1, w2, b2)
    jax.block_until_ready(latent)
    assert latent.shape == (B, NUM_FILTERS)

    # Pure-JAX reference of the original (concat-based) math, using the same
    # bf16-cast operands; tolerance relaxed for the bf16 intermediate cast.
    f32 = jnp.float32
    xin = jnp.concatenate([x.astype(jnp.bfloat16).astype(f32),
                           target.astype(jnp.bfloat16).astype(f32)], axis=1)
    w1_full = jnp.concatenate([w1a, w1b], axis=0).astype(f32)
    h_ref = jnp.maximum(xin @ w1_full + b1, 0.0)
    ref = h_ref.astype(jnp.bfloat16).astype(f32) @ w2.astype(f32) + b2
    assert jnp.allclose(latent.astype(f32), ref, atol=5e-2, rtol=5e-2)

    # Also exercise the target=None (eval) path once.
    w1a_e, _, b1_e, w2_e, b2_e = init_params(kp, IN_FEATURES, NUM_FILTERS,
                                             NUM_CLASSES, training=False)
    latent_eval = mlp_forward(x, None, w1a_e, None, b1_e, w2_e, b2_e)
    jax.block_until_ready(latent_eval)
    assert latent_eval.shape == (B, NUM_FILTERS)
    h_e = jnp.maximum(x.astype(jnp.bfloat16).astype(f32) @ w1a_e.astype(f32) + b1_e, 0.0)
    ref_e = h_e.astype(jnp.bfloat16).astype(f32) @ w2_e.astype(f32) + b2_e
    assert jnp.allclose(latent_eval.astype(f32), ref_e, atol=5e-2, rtol=5e-2)

    print("KERNEL_OK")
</pallas_src>

<mosaic_0001>
module attributes {stable_mosaic.version = 11 : i64} {
  func.func @_mlp_train_kernel(%arg0: i32, %arg1: memref<8x16xbf16, #tpu.memory_space<vmem>>, %arg2: memref<8x4xbf16, #tpu.memory_space<vmem>>, %arg3: memref<16x128xbf16, #tpu.memory_space<vmem>>, %arg4: memref<4x128xbf16, #tpu.memory_space<vmem>>, %arg5: memref<1x128xf32, #tpu.memory_space<vmem>>, %arg6: memref<128x32xbf16, #tpu.memory_space<vmem>>, %arg7: memref<1x32xf32, #tpu.memory_space<vmem>>, %arg8: memref<8x32xbf16, #tpu.memory_space<vmem>>) attributes {dimension_semantics = [#tpu.dimension_semantics<parallel>], iteration_bounds = array<i64: 1>, scalar_prefetch = 0 : i64, scratch_operands = 0 : i64, tpu.core_type = #tpu.core_type<tc>, window_params = [{transform_indices = @transform_0, window_bounds = array<i64: 8, 16>}, {transform_indices = @transform_1, window_bounds = array<i64: 8, 4>}, {pipeline_mode = #tpu.pipeline_mode<synchronous>, transform_indices = @transform_2, window_bounds = array<i64: 16, 128>}, {pipeline_mode = #tpu.pipeline_mode<synchronous>, transform_indices = @transform_3, window_bounds = array<i64: 4, 128>}, {pipeline_mode = #tpu.pipeline_mode<synchronous>, transform_indices = @transform_4, window_bounds = array<i64: 1, 128>}, {pipeline_mode = #tpu.pipeline_mode<synchronous>, transform_indices = @transform_5, window_bounds = array<i64: 128, 32>}, {pipeline_mode = #tpu.pipeline_mode<synchronous>, transform_indices = @transform_6, window_bounds = array<i64: 1, 32>}, {transform_indices = @transform_7, window_bounds = array<i64: 8, 32>}]} {
    %c0 = arith.constant 0 : index
    %c0_0 = arith.constant 0 : index
    %0 = vector.load %arg1[%c0, %c0_0] : memref<8x16xbf16, #tpu.memory_space<vmem>>, vector<8x16xbf16>
    %c0_1 = arith.constant 0 : index
    %c0_2 = arith.constant 0 : index
    %1 = vector.load %arg3[%c0_1, %c0_2] : memref<16x128xbf16, #tpu.memory_space<vmem>>, vector<16x128xbf16>
    %cst = arith.constant dense<0.000000e+00> : vector<8x128xf32>
    %2 = tpu.matmul %0, %1, %cst {dimension_numbers = #tpu.dot_dimension_numbers<[1], [0], [0], [1], [0, 0, 1, 1], [], []>} : vector<8x16xbf16>, vector<16x128xbf16>, vector<8x128xf32> -> vector<8x128xf32>
    %c0_3 = arith.constant 0 : index
    %c0_4 = arith.constant 0 : index
    %3 = vector.load %arg2[%c0_3, %c0_4] : memref<8x4xbf16, #tpu.memory_space<vmem>>, vector<8x4xbf16>
    %c0_5 = arith.constant 0 : index
    %c0_6 = arith.constant 0 : index
    %4 = vector.load %arg4[%c0_5, %c0_6] : memref<4x128xbf16, #tpu.memory_space<vmem>>, vector<4x128xbf16>
    %cst_7 = arith.constant dense<0.000000e+00> : vector<8x128xf32>
    %5 = tpu.matmul %3, %4, %cst_7 {dimension_numbers = #tpu.dot_dimension_numbers<[1], [0], [0], [1], [0, 0, 1, 1], [], []>} : vector<8x4xbf16>, vector<4x128xbf16>, vector<8x128xf32> -> vector<8x128xf32>
    %6 = arith.addf %2, %5 : vector<8x128xf32>
    %c0_8 = arith.constant 0 : index
    %c0_9 = arith.constant 0 : index
    %7 = vector.load %arg5[%c0_8, %c0_9] : memref<1x128xf32, #tpu.memory_space<vmem>>, vector<1x128xf32>
    %8 = vector.broadcast %7 : vector<1x128xf32> to vector<8x128xf32>
    %9 = arith.addf %6, %8 : vector<8x128xf32>
    %cst_10 = arith.constant 0.000000e+00 : f32
    %10 = vector.broadcast %cst_10 : f32 to vector<8x128xf32>
    %11 = arith.maximumf %9, %10 : vector<8x128xf32>
    %12 = arith.truncf %11 : vector<8x128xf32> to vector<8x128xbf16>
    %c0_11 = arith.constant 0 : index
    %c0_12 = arith.constant 0 : index
    %13 = vector.load %arg6[%c0_11, %c0_12] : memref<128x32xbf16, #tpu.memory_space<vmem>>, vector<128x32xbf16>
    %cst_13 = arith.constant dense<0.000000e+00> : vector<8x32xf32>
    %14 = tpu.matmul %12, %13, %cst_13 {dimension_numbers = #tpu.dot_dimension_numbers<[1], [0], [0], [1], [0, 0, 1, 1], [], []>} : vector<8x128xbf16>, vector<128x32xbf16>, vector<8x32xf32> -> vector<8x32xf32>
    %c0_14 = arith.constant 0 : index
    %c0_15 = arith.constant 0 : index
    %15 = vector.load %arg7[%c0_14, %c0_15] : memref<1x32xf32, #tpu.memory_space<vmem>>, vector<1x32xf32>
    %16 = vector.broadcast %15 : vector<1x32xf32> to vector<8x32xf32>
    %17 = arith.addf %14, %16 : vector<8x32xf32>
    %18 = arith.truncf %17 : vector<8x32xf32> to vector<8x32xbf16>
    %c0_16 = arith.constant 0 : index
    %c0_17 = arith.constant 0 : index
    %19 = vector.load %arg8[%c0_16, %c0_17] : memref<8x32xbf16, #tpu.memory_space<vmem>>, vector<8x32xbf16>
    tpu.vector_store %arg8[%c0_16, %c0_17], %18 {strides = array<i32>} : memref<8x32xbf16, #tpu.memory_space<vmem>>, vector<8x32xbf16>,
    return
  }
  func.func @transform_0(%arg0: i32) -> (i32, i32) {
    %c0_i32 = arith.constant 0 : i32
    %c0_i32_0 = arith.constant 0 : i32
    return %arg0, %c0_i32 : i32, i32
  }
  func.func @transform_1(%arg0: i32) -> (i32, i32) {
    %c0_i32 = arith.constant 0 : i32
    %c0_i32_0 = arith.constant 0 : i32
    return %arg0, %c0_i32 : i32, i32
  }
  func.func @transform_2(%arg0: i32) -> (i32, i32) {
    %c0_i32 = arith.constant 0 : i32
    %c0_i32_0 = arith.constant 0 : i32
    %c0_i32_1 = arith.constant 0 : i32
    return %c0_i32, %c0_i32_0 : i32, i32
  }
  func.func @transform_3(%arg0: i32) -> (i32, i32) {
    %c0_i32 = arith.constant 0 : i32
    %c0_i32_0 = arith.constant 0 : i32
    %c0_i32_1 = arith.constant 0 : i32
    return %c0_i32, %c0_i32_0 : i32, i32
  }
  func.func @transform_4(%arg0: i32) -> (i32, i32) {
    %c0_i32 = arith.constant 0 : i32
    %c0_i32_0 = arith.constant 0 : i32
    %c0_i32_1 = arith.constant 0 : i32
    return %c0_i32, %c0_i32_0 : i32, i32
  }
  func.func @transform_5(%arg0: i32) -> (i32, i32) {
    %c0_i32 = arith.constant 0 : i32
    %c0_i32_0 = arith.constant 0 : i32
    %c0_i32_1 = arith.constant 0 : i32
    return %c0_i32, %c0_i32_0 : i32, i32
  }
  func.func @transform_6(%arg0: i32) -> (i32, i32) {
    %c0_i32 = arith.constant 0 : i32
    %c0_i32_0 = arith.constant 0 : i32
    %c0_i32_1 = arith.constant 0 : i32
    return %c0_i32, %c0_i32_0 : i32, i32
  }
  func.func @transform_7(%arg0: i32) -> (i32, i32) {
    %c0_i32 = arith.constant 0 : i32
    %c0_i32_0 = arith.constant 0 : i32
    return %arg0, %c0_i32 : i32, i32
  }
}

</mosaic_0001>

<bundles_post_ra>
// kernel: tpu_custom_call.1
= control target key start
LH: loop header
LB: loop body
LE: loop exit
PB: predicated region body
PF: predicated region fallthrough
CT: control target
= control target key end

     0   :  { %vm37_vm0 = vcmask 1041408   ;;  %v363_v1 = vmov 0.0   ;;  %vm364_vm1 = vmmov 0   ;;  %vm33_vm2 = vcmask 31744   ;;  %s460_s0 = inlined_call_operand.vmem [shape: bf16[8,16], index: 0, kind: input, shape index: {}]   ;;  %s461_s1 = inlined_call_operand.vmem [shape: bf16[8,4], index: 1, kind: input, shape index: {}]   ;;  %s462_s2 = inlined_call_operand.vmem [shape: bf16[16,128], index: 2, kind: input, shape index: {}]   ;;  %s463_s3 = inlined_call_operand.vmem [shape: bf16[4,128], index: 3, kind: input, shape index: {}]   ;;  %s464_s4 = inlined_call_operand.vmem [shape: f32[1,128], index: 4, kind: input, shape index: {}]   ;;  %s465_s5 = inlined_call_operand.vmem [shape: bf16[128,32], index: 5, kind: input, shape index: {}]   ;;  %s466_s6 = inlined_call_operand.vmem [shape: f32[1,32], index: 6, kind: input, shape index: {}]   ;;  %s467_s7 = inlined_call_operand.hbm [shape: bf16[8,32], index: 7, kind: output, shape index: {}]  }
   0x1   :  { %v32_v0 = vld [vmem:[%s463_s3] sm:$0x3]  ;;  %295 = vmatprep.subr.bf16.mxu1 %v363_v1  ;;  %297 = vmatprep.mubr.msk.bf16.mxu1 %vm364_vm1, %v363_v1  ;;  %v332_v6 = vld [vmem:[%s465_s5 + $0x8] sm:$0xff]   ;;  %v333_v7 = vld [vmem:[%s465_s5 + $0x10] sm:$0xff]  }
   0x2   :  { %v39_v2 = vsel %vm37_vm0, %v32_v0, 0  ;;  %v31_v3 = vld [vmem:[%s461_s1] sm:$0xf]  ;;  %307 = vmatprep.subr.bf16.mxu0 %v363_v1  ;;  %323 = vmatprep.mubr.msk.bf16.mxu0 %vm364_vm1, %v363_v1 }
   0x3   :  { %296 = vmatpush3.bf16.msra.mxu1 %v39_v2  ;;  %v330_v4 = vld [vmem:[%s462_s2] sm:$0xff]  }
   0x4   :  { %v331_v5 = vld [vmem:[%s465_s5] sm:$0xff]   ;;  %301 = vmatprep.subr.bf16.mxu1 %v363_v1 }
   0x5   :  { %308 = vmatpush3.bf16.msra.mxu0 %v331_v5 }
   0x6   :  { %298 = vmatmul.mubr.msk.bf16.vlgmr.msra.gmra.mrb[0].mxu1 %vm33_vm2, %v31_v3  ;;  %309 = vmatprep.subr.bf16.mxu0 %v363_v1 }
   0x7   :  { %302 = vmatpush3.bf16.msra.mxu1 %v330_v4  ;;  %303 = vmatprep.mubr.msk.bf16.mxu1 %vm364_vm1, %v363_v1 }
   0x9   :  { %310 = vmatpush3.bf16.msra.mxu0 %v332_v6 }
   0xa   :  { %311 = vmatprep.subr.bf16.mxu0 %v363_v1 }
   0xb   :  { %12 = vsyncpa [#allocation3], 0  ;;  %v28_v8 = vld [vmem:[%s460_s0] sm:$0xf]  ;;  %vm87_vm3 = vcmask 130048   ;;  %v334_v9 = vld [vmem:[%s465_s5 + $0x18] sm:$0xff]  }
   0xc   :  { %v335_v10 = vld [vmem:[%s465_s5 + $0x20] sm:$0xff]   ;;  %v336_v11 = vld [vmem:[%s465_s5 + $0x28] sm:$0xff]   ;;  %v337_v12 = vld [vmem:[%s465_s5 + $0x30] sm:$0xff]   ;;  %s365_s24 = smov [#allocation2]   ;;  %vm253_vm4 = vcmask 257024  }
   0xd   :  { %312 = vmatpush3.bf16.msra.mxu0 %v333_v7  ;;  %v338_v13 = vld [vmem:[%s465_s5 + $0x38] sm:$0xff]   ;;  %v272_v19 = vld [vmem:[%s464_s4] ss:$0 sm:$0xff]  ;;  %s261_s25 = sshll.u32 %s365_s24, 4  ;;  %s262_s25 = int_to_ptr.vmem [resolvable:$true] %s261_s25 }
   0xe   :  { %304 = vmatmul.mubr.msk.bf16.vlgmr.msra.gmra.mrb[4].mxu1 %vm87_vm3, %v28_v8  ;;  %313 = vmatprep.subr.bf16.mxu0 %v363_v1  ;;  %v273_v27 = vld [vmem:[%s466_s6] ss:$0 sm:$0xff]  ;;  %s339_s4 = scalar_lea.vmem %s262_s25, 64  ;;  %p344_p1 = scmp.lt.s32.totalorder %s262_s25, %s262_s25 }
   0xf   :  { %p340_p0 = scmp.ne.s32.totalorder %s262_s25, %s339_s4  ;;  %p345_p2 = scmp.lt.s32.totalorder %s339_s4, %s339_s4 }
  0x11   :  { %314 = vmatpush3.bf16.msra.mxu0 %v334_v9  ;;  %p346_p3 = por %p345_p2, %p344_p1 }
  0x12   :  { %315 = vmatprep.subr.bf16.mxu0 %v363_v1 }
  0x13   :  { %p347_p4 = pnand %p346_p3, %p340_p0 }
  0x15   :  { %316 = vmatpush3.bf16.msra.mxu0 %v335_v10 }
  0x16   :  { %317 = vmatprep.subr.bf16.mxu0 %v363_v1 }
  0x19   :  { %318 = vmatpush3.bf16.msra.mxu0 %v336_v11 }
  0x1a   :  { %319 = vmatprep.subr.bf16.mxu0 %v363_v1 }
  0x1d   :  { %320 = vmatpush3.bf16.msra.mxu0 %v337_v12 }
  0x1e   :  { %321 = vmatprep.subr.bf16.mxu0 %v363_v1 }
  0x21   :  { %322 = vmatpush3.bf16.msra.mxu0 %v338_v13 }
  0xd9   :  { %v75_v14 = vpop.f32.mrb[0].mxu1 }
  0xda   :  { %v299_v15 = vpop.f32.mrb[1].mxu1 }
  0xdb   :  { %v78_v16 = vpop.f32.mrb[2].mxu1 }
  0xdc   :  { %v300_v17 = vpop.f32.mrb[3].mxu1 }
  0xe1   :  { %v125_v18 = vpop.f32.mrb[4].mxu1 }
  0xe2   :  { %v126_v20 = vadd.f32 %v125_v18, %v75_v14  ;;  %v305_v21 = vpop.f32.mrb[5].mxu1 }
  0xe3   :  { %v128_v22 = vpop.f32.mrb[6].mxu1 }
  0xe4   :  { %v138_v23 = vadd.f32 %v272_v19, %v126_v20  ;;  %v306_v24 = vpop.f32.mrb[7].mxu1 }
  0xe6   :  { %v139_v25 = vmax.f32 %v138_v23, 0.0 }
  0xe8   :  { %v140_v26 = vpack.c.bf16 %v139_v25, %v139_v25 }
  0xea   :  { %324 = vmatmul.mubr.bf16.vlgmr.msra.gmra.mrb[0].mxu0 %v140_v26 }
 0x1bd   :  { %v246_v28 = vpop.f32.mrb[0].mxu0 }
 0x1be   :  { %v247_v29 = vadd.f32 %v273_v27, %v246_v28  ;;  %v325_v30 = vpop.f32.mrb[1].mxu0 }
 0x1bf   :  { %v249_v31 = vpop.f32.mrb[2].mxu0 }
 0x1c0   :  { %v252_v32 = vpack.c.bf16 %v247_v29, %v247_v29  ;;  %v326_v33 = vpop.f32.mrb[3].mxu0 }
 0x1c2   :  { %254 = vst.msk [vmem:[#allocation2] sm:$0xf] %vm253_vm4, %v252_v32 }
 0x1c3   :  { %350 = shalt.err (!%p347_p4)
}
 0x1c4   :  { %s351_s27 = scalar_lea.hbm %s467_s7, 64 }
 0x1c5   :  { %p352_p5 = scmp.ne.s32.totalorder %s467_s7, %s351_s27  ;;  %p355_p6 = scmp.lt.u32.totalorder %s351_s27, %s467_s7 }
 0x1c7   :  { %p357_p7 = pnand %p355_p6, %p352_p5 }
 0x1c9   :  { %360 = shalt.err (!%p357_p7)
}
 0x1ca   :  { %264 = dma.vmem_to_hbm [thread:$0]  %s262_s25, 64, %s467_s7, [#allocation3]  }
 0x1cb   :  { %361 = dma.done.wait [#allocation3], 64  }
 0x1cc   :  { %362 = vsyncadd [#allocation3], 4294967232 }
 0x1cd   :  { %268 = vsyncpa [#allocation3], 1 }

</bundles_post_ra>
